<compile_context>
chip_gen: v7x
topology: tpu7x:2x2x1
jax: 0.10.0
libtpu: 0.0.40
codegen_flags: <defaults>
</compile_context>

<pallas_src>
import math
import jax
import jax.numpy as jnp
from jax.experimental import pallas as pl
from jax.experimental.pallas import tpu as pltpu


def residual_ln_kernel(x_ref, w_ref, b_ref, g_ref, beta_ref, o_ref, *, d_model, eps):
    x_f32 = x_ref[...].astype(jnp.float32)                   # (TR, D)  residual path in f32

    # sublayer(x) = Linear(x): bf16 operands on the MXU, f32 accumulation.
    sub = jnp.dot(
        x_ref[...].astype(jnp.bfloat16),                      # (TR, D) bf16
        w_ref[...],                                           # (D, D)  bf16 (pre-cast at call site)
        preferred_element_type=jnp.float32,
    ) + b_ref[...].astype(jnp.float32)                        # (1, D)

    # residual add (f32)
    y = x_f32 + sub                                           # (TR, D)

    # LayerNormalisation — torch.std semantics: unbiased (N-1), eps added to std.
    mean = jnp.mean(y, axis=-1, keepdims=True)                # (TR, 1)
    centered = y - mean
    var_unbiased = jnp.sum(centered * centered, axis=-1, keepdims=True) / (d_model - 1)
    std = jnp.sqrt(var_unbiased)
    inv = pl.reciprocal(std + eps, approx=True)               # EUP, (TR, 1)
    normed = centered * inv

    gamma = g_ref[...].astype(jnp.float32)                    # (1, D)
    beta = beta_ref[...].astype(jnp.float32)                  # (1, D)
    o_ref[...] = (gamma * normed + beta).astype(o_ref.dtype)


def residual_connection(x, w, b, gamma, beta, *, eps=1e-9, row_tile=256):
    """x: (B, S, D) f32.  w: (D, D) such that sublayer(x) = x @ w + b."""
    B, S, D = x.shape
    rows = B * S

    # Choose an MXU-friendly row tile; shrink for small inputs, pad ragged rows.
    rt = min(row_tile, ((rows + 7) // 8) * 8)
    rt = max(8, (rt // 8) * 8)                                # multiple of 8 sublanes
    n_tiles = pl.cdiv(rows, rt)
    padded_rows = n_tiles * rt

    x2 = x.reshape(rows, D)
    if padded_rows != rows:
        x2 = jnp.pad(x2, ((0, padded_rows - rows), (0, 0)))

    w_bf16 = w.astype(jnp.bfloat16)                            # halve weight DMA/VMEM
    b2 = b.reshape(1, D).astype(jnp.float32)
    g2 = gamma.reshape(1, D).astype(jnp.float32)
    be2 = beta.reshape(1, D).astype(jnp.float32)

    kernel = lambda *refs: residual_ln_kernel(*refs, d_model=D, eps=eps)

    # Constant-index blocks never re-fetch -> single buffer.
    const_buf = pl.Buffered(1)

    out = pl.pallas_call(
        kernel,
        out_shape=jax.ShapeDtypeStruct((padded_rows, D), x.dtype),
        grid_spec=pltpu.PrefetchScalarGridSpec(
            num_scalar_prefetch=0,
            grid=(n_tiles,),
            in_specs=[
                pl.BlockSpec((rt, D), lambda i: (i, 0)),                             # x rows
                pl.BlockSpec((D, D), lambda i: (0, 0), pipeline_mode=const_buf),     # weight (bf16)
                pl.BlockSpec((1, D), lambda i: (0, 0), pipeline_mode=const_buf),     # bias
                pl.BlockSpec((1, D), lambda i: (0, 0), pipeline_mode=const_buf),     # LN gamma
                pl.BlockSpec((1, D), lambda i: (0, 0), pipeline_mode=const_buf),     # LN beta
            ],
            out_specs=pl.BlockSpec((rt, D), lambda i: (i, 0)),
        ),
        compiler_params=pltpu.CompilerParams(
            dimension_semantics=("parallel",),
            vmem_limit_bytes=48 * 1024 * 1024,
        ),
    )(x2, w_bf16, b2, g2, be2)

    return out[:rows].reshape(B, S, D)


def reference(x, w, b, gamma, beta, eps=1e-9):
    # Pure f32 reference matching the PyTorch module semantics.
    sub = jnp.einsum("bsd,de->bse", x, w) + b
    y = x + sub
    mean = jnp.mean(y, axis=-1, keepdims=True)
    var = jnp.sum((y - mean) ** 2, axis=-1, keepdims=True) / (x.shape[-1] - 1)
    std = jnp.sqrt(var)
    return gamma * ((y - mean) / (std + eps)) + beta


if __name__ == "__main__":
    B, S, D = 2, 8, 32
    key = jax.random.PRNGKey(0)
    kx, kw, kb = jax.random.split(key, 3)

    x = jax.random.normal(kx, (B, S, D), dtype=jnp.float32)

    # Deterministic sublayer params (nn.Linear(d_model, d_model) style init).
    bound = 1.0 / math.sqrt(D)
    w_t = jax.random.uniform(kw, (D, D), minval=-bound, maxval=bound,
                             dtype=jnp.float32)  # laid out so sublayer(x) = x @ w_t + b
    b = jax.random.uniform(kb, (D,), minval=-bound, maxval=bound, dtype=jnp.float32)

    # LayerNormalisation params (as in __init__): ones / zeros.
    gamma = jnp.ones((D,), dtype=jnp.float32)
    beta = jnp.zeros((D,), dtype=jnp.float32)

    out = residual_connection(x, w_t, b, gamma, beta)
    out = jax.block_until_ready(out)

    ref = reference(x, w_t, b, gamma, beta)
    assert out.shape == (B, S, D)
    # bf16 matmul operands + approx EUP reciprocal -> slightly looser tolerance vs f32 ref.
    assert jnp.allclose(out, ref, atol=2e-2, rtol=2e-2), float(jnp.max(jnp.abs(out - ref)))

    print("KERNEL_OK")
</pallas_src>

<mosaic_0001>
module attributes {stable_mosaic.version = 11 : i64} {
  func.func @_lambda_(%arg0: i32, %arg1: memref<16x32xf32, #tpu.memory_space<vmem>>, %arg2: memref<32x32xbf16, #tpu.memory_space<vmem>>, %arg3: memref<1x32xf32, #tpu.memory_space<vmem>>, %arg4: memref<1x32xf32, #tpu.memory_space<vmem>>, %arg5: memref<1x32xf32, #tpu.memory_space<vmem>>, %arg6: memref<16x32xf32, #tpu.memory_space<vmem>>) attributes {dimension_semantics = [#tpu.dimension_semantics<parallel>], iteration_bounds = array<i64: 1>, scalar_prefetch = 0 : i64, scratch_operands = 0 : i64, tpu.core_type = #tpu.core_type<tc>, window_params = [{transform_indices = @transform_0, window_bounds = array<i64: 16, 32>}, {pipeline_mode = #tpu.pipeline_mode<synchronous>, transform_indices = @transform_1, window_bounds = array<i64: 32, 32>}, {pipeline_mode = #tpu.pipeline_mode<synchronous>, transform_indices = @transform_2, window_bounds = array<i64: 1, 32>}, {pipeline_mode = #tpu.pipeline_mode<synchronous>, transform_indices = @transform_3, window_bounds = array<i64: 1, 32>}, {pipeline_mode = #tpu.pipeline_mode<synchronous>, transform_indices = @transform_4, window_bounds = array<i64: 1, 32>}, {transform_indices = @transform_5, window_bounds = array<i64: 16, 32>}]} {
    %c0 = arith.constant 0 : index
    %c0_0 = arith.constant 0 : index
    %0 = vector.load %arg1[%c0, %c0_0] : memref<16x32xf32, #tpu.memory_space<vmem>>, vector<16x32xf32>
    %c0_1 = arith.constant 0 : index
    %c0_2 = arith.constant 0 : index
    %1 = vector.load %arg1[%c0_1, %c0_2] : memref<16x32xf32, #tpu.memory_space<vmem>>, vector<16x32xf32>
    %2 = arith.truncf %1 : vector<16x32xf32> to vector<16x32xbf16>
    %c0_3 = arith.constant 0 : index
    %c0_4 = arith.constant 0 : index
    %3 = vector.load %arg2[%c0_3, %c0_4] : memref<32x32xbf16, #tpu.memory_space<vmem>>, vector<32x32xbf16>
    %cst = arith.constant dense<0.000000e+00> : vector<16x32xf32>
    %4 = tpu.matmul %2, %3, %cst {dimension_numbers = #tpu.dot_dimension_numbers<[1], [0], [0], [1], [0, 0, 1, 1], [], []>} : vector<16x32xbf16>, vector<32x32xbf16>, vector<16x32xf32> -> vector<16x32xf32>
    %c0_5 = arith.constant 0 : index
    %c0_6 = arith.constant 0 : index
    %5 = vector.load %arg3[%c0_5, %c0_6] : memref<1x32xf32, #tpu.memory_space<vmem>>, vector<1x32xf32>
    %6 = vector.broadcast %5 : vector<1x32xf32> to vector<16x32xf32>
    %7 = arith.addf %4, %6 : vector<16x32xf32>
    %8 = arith.addf %0, %7 : vector<16x32xf32>
    %cst_7 = arith.constant dense<0.000000e+00> : vector<16xf32>
    %9 = vector.multi_reduction <add>, %8, %cst_7 [1] : vector<16x32xf32> to vector<16xf32>
    %10 = vector.shape_cast %9 : vector<16xf32> to vector<16x1xf32>
    %cst_8 = arith.constant 3.200000e+01 : f32
    %11 = vector.broadcast %cst_8 : f32 to vector<16x1xf32>
    %12 = arith.divf %10, %11 : vector<16x1xf32>
    %13 = vector.broadcast %12 : vector<16x1xf32> to vector<16x32xf32>
    %14 = arith.subf %8, %13 : vector<16x32xf32>
    %15 = arith.mulf %14, %14 : vector<16x32xf32>
    %cst_9 = arith.constant dense<0.000000e+00> : vector<16xf32>
    %16 = vector.multi_reduction <add>, %15, %cst_9 [1] : vector<16x32xf32> to vector<16xf32>
    %17 = vector.shape_cast %16 : vector<16xf32> to vector<16x1xf32>
    %cst_10 = arith.constant 3.100000e+01 : f32
    %18 = vector.broadcast %cst_10 : f32 to vector<16x1xf32>
    %19 = arith.divf %17, %18 : vector<16x1xf32>
    %20 = math.sqrt %19 : vector<16x1xf32>
    %cst_11 = arith.constant 9.99999971E-10 : f32
    %21 = vector.broadcast %cst_11 : f32 to vector<16x1xf32>
    %22 = arith.addf %20, %21 : vector<16x1xf32>
    %23 = tpu.reciprocal %22 {approx = true} : vector<16x1xf32> -> vector<16x1xf32>
    %24 = vector.broadcast %23 : vector<16x1xf32> to vector<16x32xf32>
    %25 = arith.mulf %14, %24 : vector<16x32xf32>
    %c0_12 = arith.constant 0 : index
    %c0_13 = arith.constant 0 : index
    %26 = vector.load %arg4[%c0_12, %c0_13] : memref<1x32xf32, #tpu.memory_space<vmem>>, vector<1x32xf32>
    %c0_14 = arith.constant 0 : index
    %c0_15 = arith.constant 0 : index
    %27 = vector.load %arg5[%c0_14, %c0_15] : memref<1x32xf32, #tpu.memory_space<vmem>>, vector<1x32xf32>
    %28 = vector.broadcast %26 : vector<1x32xf32> to vector<16x32xf32>
    %29 = arith.mulf %28, %25 : vector<16x32xf32>
    %30 = vector.broadcast %27 : vector<1x32xf32> to vector<16x32xf32>
    %31 = arith.addf %29, %30 : vector<16x32xf32>
    %c0_16 = arith.constant 0 : index
    %c0_17 = arith.constant 0 : index
    %32 = vector.load %arg6[%c0_16, %c0_17] : memref<16x32xf32, #tpu.memory_space<vmem>>, vector<16x32xf32>
    tpu.vector_store %arg6[%c0_16, %c0_17], %31 {strides = array<i32>} : memref<16x32xf32, #tpu.memory_space<vmem>>, vector<16x32xf32>,
    return
  }
  func.func @transform_0(%arg0: i32) -> (i32, i32) {
    %c0_i32 = arith.constant 0 : i32
    %c0_i32_0 = arith.constant 0 : i32
    return %arg0, %c0_i32 : i32, i32
  }
  func.func @transform_1(%arg0: i32) -> (i32, i32) {
    %c0_i32 = arith.constant 0 : i32
    %c0_i32_0 = arith.constant 0 : i32
    %c0_i32_1 = arith.constant 0 : i32
    return %c0_i32, %c0_i32_0 : i32, i32
  }
  func.func @transform_2(%arg0: i32) -> (i32, i32) {
    %c0_i32 = arith.constant 0 : i32
    %c0_i32_0 = arith.constant 0 : i32
    %c0_i32_1 = arith.constant 0 : i32
    return %c0_i32, %c0_i32_0 : i32, i32
  }
  func.func @transform_3(%arg0: i32) -> (i32, i32) {
    %c0_i32 = arith.constant 0 : i32
    %c0_i32_0 = arith.constant 0 : i32
    %c0_i32_1 = arith.constant 0 : i32
    return %c0_i32, %c0_i32_0 : i32, i32
  }
  func.func @transform_4(%arg0: i32) -> (i32, i32) {
    %c0_i32 = arith.constant 0 : i32
    %c0_i32_0 = arith.constant 0 : i32
    %c0_i32_1 = arith.constant 0 : i32
    return %c0_i32, %c0_i32_0 : i32, i32
  }
  func.func @transform_5(%arg0: i32) -> (i32, i32) {
    %c0_i32 = arith.constant 0 : i32
    %c0_i32_0 = arith.constant 0 : i32
    return %arg0, %c0_i32 : i32, i32
  }
}

</mosaic_0001>

<bundles_post_ra>
// kernel: tpu_custom_call.1
= control target key start
LH: loop header
LB: loop body
LE: loop exit
PB: predicated region body
PF: predicated region fallthrough
CT: control target
= control target key end

     0   :  { %10 = vsyncpa [#allocation3], 0  ;;  %s408_s0 = inlined_call_operand.hbm [shape: f32[16,32], index: 0, kind: input, shape index: {}]   ;;  %s409_s1 = inlined_call_operand.hbm [shape: bf16[32,32], index: 1, kind: input, shape index: {}]   ;;  %s410_s2 = inlined_call_operand.vmem [shape: f32[1,32], index: 2, kind: input, shape index: {}]   ;;  %s411_s3 = inlined_call_operand.vmem [shape: f32[1,32], index: 3, kind: input, shape index: {}]   ;;  %s412_s4 = inlined_call_operand.vmem [shape: f32[1,32], index: 4, kind: input, shape index: {}]   ;;  %s413_s5 = inlined_call_operand.hbm [shape: f32[16,32], index: 5, kind: output, shape index: {}]  }
   0x1   :  { %11 = vsyncpa [#allocation6], 0 }
   0x2   :  { %12 = vsyncpa [#allocation4], 0  ;;  %s311_s18 = smov [#allocation2]   ;;  %s239_s22 = scalar_lea.hbm %s408_s0, 256 }
   0x3   :  { %s18_s19 = sshll.u32 %s311_s18, 4  ;;  %p240_p0 = scmp.ne.s32.totalorder %s408_s0, %s239_s22  ;;  %s19_s19 = int_to_ptr.vmem [resolvable:$true] %s18_s19 }
   0x4   :  { %p243_p1 = scmp.lt.u32.totalorder %s239_s22, %s408_s0 }
   0x6   :  { %p245_p2 = pnand %p243_p1, %p240_p0 }
   0x8   :  { %248 = shalt.err (!%p245_p2)
}
   0x9   :  { %s249_s27 = scalar_lea.vmem %s19_s19, 256  ;;  %p254_p4 = scmp.lt.s32.totalorder %s19_s19, %s19_s19 }
   0xa   :  { %p250_p3 = scmp.ne.s32.totalorder %s19_s19, %s249_s27  ;;  %p255_p5 = scmp.lt.s32.totalorder %s249_s27, %s249_s27 }
   0xc   :  { %p256_p6 = por %p255_p5, %p254_p4 }
   0xe   :  { %p257_p7 = pnand %p256_p6, %p250_p3 }
  0x10   :  { %260 = shalt.err (!%p257_p7)
}
  0x11   :  { %s312_s28 = smov 128   ;;  %s313_s29 = smov 8  }
  0x12   :  { %24 = dma.hbm_to_vmem [thread:$0]  %s408_s0, 256, %s19_s19, [#allocation3], %s312_s28, %s312_s28, %s313_s29  }
  0x13   :  { %s314_s7 = smov [#allocation5]   ;;  %s261_s11 = scalar_lea.hbm %s409_s1, 256 }
  0x14   :  { %s30_s8 = sshll.u32 %s314_s7, 4  ;;  %p262_p8 = scmp.ne.s32.totalorder %s409_s1, %s261_s11  ;;  %s31_s8 = int_to_ptr.vmem [resolvable:$true] %s30_s8 }
  0x15   :  { %p265_p9 = scmp.lt.u32.totalorder %s261_s11, %s409_s1 }
  0x17   :  { %p267_p10 = pnand %p265_p9, %p262_p8 }
  0x19   :  { %270 = shalt.err (!%p267_p10)
}
  0x1a   :  { %s271_s16 = scalar_lea.vmem %s31_s8, 256  ;;  %p276_p12 = scmp.lt.s32.totalorder %s31_s8, %s31_s8 }
  0x1b   :  { %p272_p11 = scmp.ne.s32.totalorder %s31_s8, %s271_s16  ;;  %p277_p13 = scmp.lt.s32.totalorder %s271_s16, %s271_s16 }
  0x1d   :  { %p278_p0 = por %p277_p13, %p276_p12 }
  0x1f   :  { %p279_p1 = pnand %p278_p0, %p272_p11 }
  0x21   :  { %282 = shalt.err (!%p279_p1)
}
  0x22   :  { %s315_s0 = smov 64   ;;  %s316_s17 = smov 4  }
  0x23   :  { %36 = dma.hbm_to_vmem [thread:$0]  %s409_s1, 256, %s31_s8, [#allocation6], %s315_s0, %s315_s0, %s316_s17  }
  0x24   :  { %305 = dma.done.wait [#allocation3], 256  }
  0x25   :  { %306 = vsyncadd [#allocation3], 4294967040 }
  0x26   :  { %307 = dma.done.wait [#allocation6], 256  }
  0x27   :  { %308 = vsyncadd [#allocation6], 4294967040  ;;  %v317_v0 = vmov 0.0   ;;  %vm318_vm0 = vmmov 0   ;;  %v229_v1 = vld [vmem:[#allocation5] sm:$0xff]   ;;  %v230_v2 = vld [vmem:[#allocation5 + $0x8] sm:$0xff]  }
  0x28   :  { %212 = vmatprep.subr.bf16.mxu0 %v317_v0  ;;  %216 = vmatprep.mubr.msk.bf16.mxu0 %vm318_vm0, %v317_v0  ;;  %v50_v3 = vld [vmem:[#allocation2] sm:$0xff]  ;;  %v51_v4 = vld [vmem:[#allocation2 + $0x8] sm:$0xff]  ;;  %vm76_vm1 = vcmask 261120   ;;  %s319_s24 = smov [#allocation7]  }
  0x29   :  { %213 = vmatpush3.bf16.msra.mxu0 %v229_v1  ;;  %v52_v5 = vpack.c.bf16 %v51_v4, %v50_v3  ;;  %v203_v6 = vld [vmem:[%s410_s2] ss:$0 sm:$0xff]  ;;  %s190_s25 = sshll.u32 %s319_s24, 4  ;;  %s191_s25 = int_to_ptr.vmem [resolvable:$true] %s190_s25 }
  0x2a   :  { %214 = vmatprep.subr.bf16.mxu0 %v317_v0  ;;  %v207_v44 = vld [vmem:[%s411_s3] ss:$0 sm:$0xff]  ;;  %s283_s26 = scalar_lea.vmem %s191_s25, 256  ;;  %p288_p3 = scmp.lt.s32.totalorder %s191_s25, %s191_s25 }
  0x2b   :  { %v208_v46 = vld [vmem:[%s412_s4] ss:$0 sm:$0xff]  ;;  %p284_p2 = scmp.ne.s32.totalorder %s191_s25, %s283_s26  ;;  %p289_p4 = scmp.lt.s32.totalorder %s283_s26, %s283_s26 }
  0x2d   :  { %215 = vmatpush3.bf16.msra.mxu0 %v230_v2  ;;  %p290_p5 = por %p289_p4, %p288_p3 }
  0x2f   :  { %p291_p6 = pnand %p290_p5, %p284_p2 }
  0x30   :  { %217 = vmatmul.mubr.msk.bf16.vlgmr.msra.gmra.mrb[0].mxu0 %vm76_vm1, %v52_v5 }
 0x103   :  { %v114_v7 = vpop.f32.mrb[0].mxu0 }
 0x104   :  { %v115_v8 = vadd.f32 %v203_v6, %v114_v7  ;;  %v218_v9 = vpop.f32.mrb[1].mxu0 }
 0x105   :  { %v117_v10 = vpop.f32.mrb[2].mxu0 }
 0x106   :  { %v118_v11 = vadd.f32 %v203_v6, %v117_v10  ;;  %v219_v12 = vpop.f32.mrb[3].mxu0  ;;  %v121_v13 = vadd.f32 %v115_v8, %v50_v3 }
 0x108   :  { %v123_v14 = vsel %vm76_vm1, %v121_v13, 0.0  ;;  %v122_v15 = vadd.f32 %v118_v11, %v51_v4 }
 0x109   :  { %124 = vadd.xlane.f32.xlu0 %v123_v14 }
 0x10a   :  { %v126_v16 = vsel %vm76_vm1, %v122_v15, 0.0 }
 0x10d   :  { %127 = vadd.xlane.f32.xlu0 %v126_v16 }
 0x196   :  { %v125_v17 = vpop.xlane.xlu0 %124 }
 0x197   :  { %v130_v18 = vmul.f32 0.03125, %v125_v17 }
 0x199   :  { %v132_v19 = vsub.f32 %v121_v13, %v130_v18 }
 0x19a   :  { %v128_v20 = vpop.xlane.xlu0 %127 }
 0x19b   :  { %v131_v21 = vmul.f32 0.03125, %v128_v20  ;;  %v134_v22 = vmul.f32 %v132_v19, %v132_v19 }
 0x19d   :  { %v133_v23 = vsub.f32 %v122_v15, %v131_v21  ;;  %v136_v24 = vsel %vm76_vm1, %v134_v22, 0.0 }
 0x19e   :  { %137 = vadd.xlane.f32.xlu1 %v136_v24 }
 0x19f   :  { %v135_v25 = vmul.f32 %v133_v23, %v133_v23 }
 0x1a1   :  { %v139_v26 = vsel %vm76_vm1, %v135_v25, 0.0 }
 0x1a2   :  { %140 = vadd.xlane.f32.xlu1 %v139_v26 }
 0x22b   :  { %v138_v27 = vpop.xlane.xlu1 %137 }
 0x22c   :  { %v143_v28 = vmul.f32 0.032258064, %v138_v27 }
 0x22e   :  { %231 = vrsqrt.f32 %v143_v28  ;;  %vm147_vm2 = vcmp.eq.f32.partialorder %v143_v28, inf  ;;  %v150_v33 = vand.u32 2147483648, %v143_v28  ;;  %vm149_vm3 = vcmp.eq.f32.partialorder %v143_v28, 0.0 }
 0x22f   :  { %v141_v29 = vpop.xlane.xlu1 %140 }
 0x230   :  { %v144_v30 = vmul.f32 0.032258064, %v141_v29 }
 0x232   :  { %233 = vrsqrt.f32 %v144_v30  ;;  %vm154_vm4 = vcmp.eq.f32.partialorder %v144_v30, inf  ;;  %v157_v39 = vand.u32 2147483648, %v144_v30  ;;  %vm156_vm5 = vcmp.eq.f32.partialorder %v144_v30, 0.0 }
 0x238   :  { %v232_v31 = vpop.eup %231 }
 0x239   :  { %v146_v32 = vmul.f32 %v232_v31, %v143_v28 }
 0x23b   :  { %v148_v34 = vsel %vm147_vm2, %v143_v28, %v146_v32 }
 0x23c   :  { %v234_v35 = vpop.eup %233  ;;  %v151_v36 = vsel %vm149_vm3, %v150_v33, %v148_v34 }
 0x23d   :  { %v159_v37 = vadd.f32 1e-09, %v151_v36  ;;  %v153_v38 = vmul.f32 %v234_v35, %v144_v30 }
 0x23f   :  { %235 = vrcp.f32 %v159_v37  ;;  %v155_v40 = vsel %vm154_vm4, %v144_v30, %v153_v38 }
 0x240   :  { %v158_v41 = vsel %vm156_vm5, %v157_v39, %v155_v40 }
 0x241   :  { %v160_v42 = vadd.f32 1e-09, %v158_v41 }
 0x243   :  { %237 = vrcp.f32 %v160_v42 }
 0x249   :  { %v236_v43 = vpop.eup %235 }
 0x24a   :  { %v163_v45 = vmul.f32 %v236_v43, %v132_v19 }
 0x24c   :  { %v173_v47 = vmul.f32 %v207_v44, %v163_v45 }
 0x24d   :  { %v238_v48 = vpop.eup %237 }
 0x24e   :  { %v164_v49 = vmul.f32 %v238_v48, %v133_v23  ;;  %v181_v50 = vadd.f32 %v208_v46, %v173_v47 }
 0x250   :  { %v174_v51 = vmul.f32 %v207_v44, %v164_v49  ;;  %183 = vst.msk [vmem:[#allocation7] sm:$0xff] %vm76_vm1, %v181_v50 }
 0x252   :  { %v182_v52 = vadd.f32 %v208_v46, %v174_v51 }
 0x254   :  { %184 = vst.msk [vmem:[#allocation7 + $0x8] sm:$0xff] %vm76_vm1, %v182_v52 }
 0x255   :  { %294 = shalt.err (!%p291_p6)
}
 0x256   :  { %s295_s27 = scalar_lea.hbm %s413_s5, 256 }
 0x257   :  { %p296_p7 = scmp.ne.s32.totalorder %s413_s5, %s295_s27  ;;  %p299_p8 = scmp.lt.u32.totalorder %s295_s27, %s413_s5 }
 0x259   :  { %p301_p9 = pnand %p299_p8, %p296_p7 }
 0x25b   :  { %304 = shalt.err (!%p301_p9)
}
 0x25c   :  { %196 = dma.vmem_to_hbm [thread:$0]  %s191_s25, 256, %s413_s5, [#allocation4], %s312_s28, %s312_s28, %s313_s29  }
 0x25d   :  { %309 = dma.done.wait [#allocation4], 256  }
 0x25e   :  { %310 = vsyncadd [#allocation4], 4294967040 }
 0x25f   :  { %200 = vsyncpa [#allocation3], 1 }
 0x260   :  { %201 = vsyncpa [#allocation6], 1 }
 0x261   :  { %202 = vsyncpa [#allocation4], 1 }

</bundles_post_ra>
